<compile_context>
chip_gen: v7x
topology: tpu7x:2x2x1
jax: 0.10.0
libtpu: 0.0.40
codegen_flags: <defaults>
</compile_context>

<pallas_src>
import jax
import jax.numpy as jnp
from jax.experimental import pallas as pl
from jax.experimental.pallas import tpu as pltpu

NUM_LAYERS = 10
FEAT = 10
TILE_M = 8192            # rows of x per grid step (natural [M, FEAT] layout)
SMALL_M_THRESHOLD = 4096  # below this, a fused XLA matmul beats the kernel launch


def _affine_kernel(x_ref, w_ref, b_ref, o_ref):
    # x_ref: [tile_m, FEAT]  natural layout (rows on sublanes, feat on lanes)
    # w_ref: [FEAT, FEAT]    composed W_eff, [in, out]
    # b_ref: [1, FEAT]       composed bias
    # o_ref: [tile_m, FEAT]
    o_ref[...] = (
        jnp.dot(x_ref[...], w_ref[...], preferred_element_type=jnp.float32)
        + b_ref[...]
    )


def _compose_affine(weights, biases):
    """Fold the 10-step ModuleList loop into a single affine map.

    Step i:  x <- x @ (W[i//2] + W[i]).T + (b[i//2] + b[i])
    =>       x_final = x @ W_eff + b_eff         (W_eff is [in, out])
    """
    w_eff = jnp.eye(FEAT, dtype=jnp.float32)
    b_eff = jnp.zeros((FEAT,), dtype=jnp.float32)
    for i in range(NUM_LAYERS):
        a_i = (weights[i // 2] + weights[i]).T.astype(jnp.float32)  # [in, out]
        c_i = (biases[i // 2] + biases[i]).astype(jnp.float32)
        w_eff = w_eff @ a_i
        b_eff = b_eff @ a_i + c_i
    return w_eff, b_eff


def my_module1_forward(x, weights, biases, *, tile_m=TILE_M, force_pallas=False):
    """x: [..., 10]; weights: [10, 10, 10] as [layer, out, in]; biases: [10, 10]."""
    orig_shape = x.shape
    m = 1
    for d in orig_shape[:-1]:
        m *= d
    x2d = x.reshape(m, FEAT).astype(jnp.float32)

    w_eff, b_eff = _compose_affine(weights, biases)      # [in, out], [out]

    # Small-M fast path: launch/overhead bound, plain XLA is cheaper.
    if not force_pallas and m < SMALL_M_THRESHOLD:
        return (x2d @ w_eff + b_eff).reshape(orig_shape)

    b_k = b_eff.reshape(1, FEAT)

    # Natural layout: no transpose, no pad. If m < tile_m, shrink the tile to
    # the full extent (block == full dim is always legal); otherwise tile_m is
    # a multiple of 8 and Pallas handles the ragged last block.
    tile_m_eff = min(tile_m, m)
    if tile_m_eff != m and tile_m_eff % 8 != 0:
        tile_m_eff = max(8, (tile_m_eff // 8) * 8)

    grid = (pl.cdiv(m, tile_m_eff),)
    out = pl.pallas_call(
        _affine_kernel,
        out_shape=jax.ShapeDtypeStruct((m, FEAT), jnp.float32),
        grid_spec=pltpu.PrefetchScalarGridSpec(
            num_scalar_prefetch=0,
            grid=grid,
            in_specs=[
                pl.BlockSpec((tile_m_eff, FEAT), lambda i: (i, 0)),  # x tile
                pl.BlockSpec((FEAT, FEAT), lambda i: (0, 0)),        # W_eff (resident)
                pl.BlockSpec((1, FEAT), lambda i: (0, 0)),           # bias (resident)
            ],
            out_specs=pl.BlockSpec((tile_m_eff, FEAT), lambda i: (i, 0)),
        ),
        compiler_params=pltpu.CompilerParams(
            dimension_semantics=("parallel",),   # shard M across TCs on v7x
        ),
        cost_estimate=pl.CostEstimate(
            flops=2 * m * FEAT * FEAT,
            transcendentals=0,
            bytes_accessed=4 * (2 * m * FEAT + FEAT * FEAT + FEAT),
        ),
    )(x2d, w_eff, b_k)

    return out.reshape(orig_shape)


def _reference_forward(x, weights, biases):
    """Pure-JAX reference replicating the PyTorch loop exactly."""
    for i in range(NUM_LAYERS):
        j = i // 2
        x1 = x @ weights[j].T + biases[j]
        x2 = x @ weights[i].T + biases[i]
        x = x1 + x2
    return x


if __name__ == "__main__":
    key = jax.random.PRNGKey(0)
    k_x, k_w, k_b = jax.random.split(key, 3)

    # Small input consistent with Linear(10, 10): leading dims mirror the
    # spec's (2, 3, 128, .) but the feature dim must be 10 for the Linears.
    x = jax.random.uniform(k_x, (2, 3, 128, FEAT), dtype=jnp.float32)

    # Deterministic param init mimicking nn.Linear default:
    # U(-1/sqrt(in_features), 1/sqrt(in_features)), W: [layer, out, in].
    bound = 1.0 / jnp.sqrt(jnp.float32(FEAT))
    weights = jax.random.uniform(
        k_w, (NUM_LAYERS, FEAT, FEAT), minval=-bound, maxval=bound,
        dtype=jnp.float32)
    biases = jax.random.uniform(
        k_b, (NUM_LAYERS, FEAT), minval=-bound, maxval=bound,
        dtype=jnp.float32)

    # TODO(synk): the PyTorch forward calls print(i, l) each iteration; that is
    # host-side logging with no compute semantics, so it is omitted here.
    # force_pallas=True so the demo exercises the kernel path (the small-M
    # fallback would otherwise handle this 768-row input in plain XLA).
    out = my_module1_forward(x, weights, biases, force_pallas=True)
    out = jax.block_until_ready(out)

    ref = _reference_forward(x.reshape(-1, FEAT), weights, biases).reshape(x.shape)
    assert out.shape == x.shape and out.dtype == jnp.float32
    # Tolerance accounts for f32 reassociation from the affine-composition fold.
    assert jnp.allclose(out, ref, rtol=5e-4, atol=5e-4), "mismatch vs reference"

    print("KERNEL_OK")
</pallas_src>

<mosaic_0001>
module attributes {stable_mosaic.version = 11 : i64} {
  func.func @_affine_kernel(%arg0: i32, %arg1: memref<768x10xf32, #tpu.memory_space<vmem>>, %arg2: memref<10x10xf32, #tpu.memory_space<vmem>>, %arg3: memref<1x10xf32, #tpu.memory_space<vmem>>, %arg4: memref<768x10xf32, #tpu.memory_space<vmem>>) attributes {dimension_semantics = [#tpu.dimension_semantics<parallel>], iteration_bounds = array<i64: 1>, scalar_prefetch = 0 : i64, scratch_operands = 0 : i64, tpu.core_type = #tpu.core_type<tc>, window_params = [{transform_indices = @transform_0, window_bounds = array<i64: 768, 10>}, {pipeline_mode = #tpu.pipeline_mode<synchronous>, transform_indices = @transform_1, window_bounds = array<i64: 10, 10>}, {pipeline_mode = #tpu.pipeline_mode<synchronous>, transform_indices = @transform_2, window_bounds = array<i64: 1, 10>}, {transform_indices = @transform_3, window_bounds = array<i64: 768, 10>}]} {
    %c0 = arith.constant 0 : index
    %c0_0 = arith.constant 0 : index
    %0 = vector.load %arg1[%c0, %c0_0] : memref<768x10xf32, #tpu.memory_space<vmem>>, vector<768x10xf32>
    %c0_1 = arith.constant 0 : index
    %c0_2 = arith.constant 0 : index
    %1 = vector.load %arg2[%c0_1, %c0_2] : memref<10x10xf32, #tpu.memory_space<vmem>>, vector<10x10xf32>
    %cst = arith.constant dense<0.000000e+00> : vector<768x10xf32>
    %2 = tpu.matmul %0, %1, %cst {dimension_numbers = #tpu.dot_dimension_numbers<[1], [0], [0], [1], [0, 0, 1, 1], [], []>} : vector<768x10xf32>, vector<10x10xf32>, vector<768x10xf32> -> vector<768x10xf32>
    %c0_3 = arith.constant 0 : index
    %c0_4 = arith.constant 0 : index
    %3 = vector.load %arg3[%c0_3, %c0_4] : memref<1x10xf32, #tpu.memory_space<vmem>>, vector<1x10xf32>
    %4 = vector.broadcast %3 : vector<1x10xf32> to vector<768x10xf32>
    %5 = arith.addf %2, %4 : vector<768x10xf32>
    %c0_5 = arith.constant 0 : index
    %c0_6 = arith.constant 0 : index
    %6 = vector.load %arg4[%c0_5, %c0_6] : memref<768x10xf32, #tpu.memory_space<vmem>>, vector<768x10xf32>
    tpu.vector_store %arg4[%c0_5, %c0_6], %5 {strides = array<i32>} : memref<768x10xf32, #tpu.memory_space<vmem>>, vector<768x10xf32>,
    return
  }
  func.func @transform_0(%arg0: i32) -> (i32, i32) {
    %c0_i32 = arith.constant 0 : i32
    %c0_i32_0 = arith.constant 0 : i32
    return %arg0, %c0_i32 : i32, i32
  }
  func.func @transform_1(%arg0: i32) -> (i32, i32) {
    %c0_i32 = arith.constant 0 : i32
    %c0_i32_0 = arith.constant 0 : i32
    %c0_i32_1 = arith.constant 0 : i32
    return %c0_i32, %c0_i32_0 : i32, i32
  }
  func.func @transform_2(%arg0: i32) -> (i32, i32) {
    %c0_i32 = arith.constant 0 : i32
    %c0_i32_0 = arith.constant 0 : i32
    %c0_i32_1 = arith.constant 0 : i32
    return %c0_i32, %c0_i32_0 : i32, i32
  }
  func.func @transform_3(%arg0: i32) -> (i32, i32) {
    %c0_i32 = arith.constant 0 : i32
    %c0_i32_0 = arith.constant 0 : i32
    return %arg0, %c0_i32 : i32, i32
  }
}

</mosaic_0001>

<bundles_post_ra>
// kernel: tpu_custom_call.1
= control target key start
LH: loop header
LB: loop body
LE: loop exit
PB: predicated region body
PF: predicated region fallthrough
CT: control target
= control target key end

     0   :  { %vm408_vm0 = vcmask 1041408   ;;  %vm119_vm1 = vcmask 80896   ;;  %vm1410_vm2 = vmmov 1   ;;  %s2306_s1 = inlined_call_operand.vmem [shape: f32[10,10], index: 1, kind: input, shape index: {}]   ;;  %s2307_s0 = inlined_call_operand.vmem [shape: f32[768,10], index: 0, kind: input, shape index: {}]   ;;  %s2308_s2 = inlined_call_operand.vmem [shape: f32[1,10], index: 2, kind: input, shape index: {}]   ;;  %s2309_s3 = inlined_call_operand.vmem [shape: f32[768,10], index: 3, kind: output, shape index: {}]  }
   0x1   :  { %v110_v0 = vld [vmem:[%s2306_s1] sm:$0xff]  ;;  %v111_v1 = vld [vmem:[%s2306_s1 + $0x8] sm:$0x3]  ;;  %vm1402_vm3 = vmpackc.low %vm408_vm0, %vm1410_vm2 }
   0x2   :  { %v1401_v2 = vpack.c.bf16 %v111_v1, %v110_v0  ;;  %v14_v3 = vld [vmem:[%s2307_s0] sm:$0xff]  ;;  %v15_v5 = vld [vmem:[%s2307_s0 + $0x8] sm:$0xff]  ;;  %v16_v7 = vld [vmem:[%s2307_s0 + $0x10] sm:$0xff] }
   0x3   :  { %v62_v4 = vld [vmem:[%s2307_s0 + $0x180] sm:$0xff]  ;;  %1257 = vmatprep.mubr.msk.f32.mxu0 %vm119_vm1, %v14_v3  ;;  %v63_v6 = vld [vmem:[%s2307_s0 + $0x188] sm:$0xff]  ;;  %v64_v8 = vld [vmem:[%s2307_s0 + $0x190] sm:$0xff] }
   0x4   :  { %1329 = vmatprep.mubr.msk.f32.mxu1 %vm119_vm1, %v62_v4  ;;  %1403 = vmatprep.subr.msk.bf16.mxu0 %vm1402_vm3, %v1401_v2  ;;  %v17_v9 = vld [vmem:[%s2307_s0 + $0x18] sm:$0xff]  ;;  %v18_v11 = vld [vmem:[%s2307_s0 + $0x20] sm:$0xff]  ;;  %v19_v13 = vld [vmem:[%s2307_s0 + $0x28] sm:$0xff] }
   0x5   :  { %1407 = vmatprep.subr.msk.bf16.mxu1 %vm1402_vm3, %v1401_v2  ;;  %1406 = vmatpush3.bf16.msk.msra.mxu0 %vm1402_vm3, %v1401_v2  ;;  %v65_v10 = vld [vmem:[%s2307_s0 + $0x198] sm:$0xff]  ;;  %v66_v12 = vld [vmem:[%s2307_s0 + $0x1a0] sm:$0xff]  ;;  %v67_v14 = vld [vmem:[%s2307_s0 + $0x1a8] sm:$0xff] }
   0x6   :  { %1408 = vmatpush3.bf16.msk.msra.mxu1 %vm1402_vm3, %v1401_v2  ;;  %v20_v15 = vld [vmem:[%s2307_s0 + $0x30] sm:$0xff]  ;;  %v21_v17 = vld [vmem:[%s2307_s0 + $0x38] sm:$0xff]  ;;  %v22_v19 = vld [vmem:[%s2307_s0 + $0x40] sm:$0xff] }
   0x7   :  { %v68_v16 = vld [vmem:[%s2307_s0 + $0x1b0] sm:$0xff]  ;;  %v69_v18 = vld [vmem:[%s2307_s0 + $0x1b8] sm:$0xff]  ;;  %v70_v20 = vld [vmem:[%s2307_s0 + $0x1c0] sm:$0xff] }
   0x8   :  { %1258 = vmatmul.mubr.msk.f32.vlgmr.msra.gmra.mrb[0].mxu0 %vm119_vm1, %v15_v5  ;;  %v23_v21 = vld [vmem:[%s2307_s0 + $0x48] sm:$0xff]  ;;  %v24_v23 = vld [vmem:[%s2307_s0 + $0x50] sm:$0xff]  ;;  %v25_v25 = vld [vmem:[%s2307_s0 + $0x58] sm:$0xff] }
   0x9   :  { %1330 = vmatmul.mubr.msk.f32.vlgmr.msra.gmra.mrb[0].mxu1 %vm119_vm1, %v63_v6  ;;  %1260 = vmatprep.mubr.msk.f32.mxu0 %vm119_vm1, %v16_v7  ;;  %v71_v22 = vld [vmem:[%s2307_s0 + $0x1c8] sm:$0xff]  ;;  %v72_v24 = vld [vmem:[%s2307_s0 + $0x1d0] sm:$0xff]  ;;  %v73_v26 = vld [vmem:[%s2307_s0 + $0x1d8] sm:$0xff] }
   0xa   :  { %1332 = vmatprep.mubr.msk.f32.mxu1 %vm119_vm1, %v64_v8  ;;  %v26_v27 = vld [vmem:[%s2307_s0 + $0x60] sm:$0xff]  ;;  %v27_v29 = vld [vmem:[%s2307_s0 + $0x68] sm:$0xff]  ;;  %v28_v31 = vld [vmem:[%s2307_s0 + $0x70] sm:$0xff] }
   0xb   :  { %v74_v28 = vld [vmem:[%s2307_s0 + $0x1e0] sm:$0xff]  ;;  %v75_v30 = vld [vmem:[%s2307_s0 + $0x1e8] sm:$0xff]  ;;  %v76_v32 = vld [vmem:[%s2307_s0 + $0x1f0] sm:$0xff] }
   0xc   :  { %1261 = vmatmul.mubr.msk.f32.gmra.mrb[2].mxu0 %vm119_vm1, %v17_v9  ;;  %v29_v33 = vld [vmem:[%s2307_s0 + $0x78] sm:$0xff]  ;;  %v30_v35 = vld [vmem:[%s2307_s0 + $0x80] sm:$0xff]  ;;  %v31_v37 = vld [vmem:[%s2307_s0 + $0x88] sm:$0xff] }
   0xd   :  { %1333 = vmatmul.mubr.msk.f32.gmra.mrb[2].mxu1 %vm119_vm1, %v65_v10  ;;  %1263 = vmatprep.mubr.msk.f32.mxu0 %vm119_vm1, %v18_v11  ;;  %v77_v34 = vld [vmem:[%s2307_s0 + $0x1f8] sm:$0xff]  ;;  %v78_v36 = vld [vmem:[%s2307_s0 + $0x200] sm:$0xff]  ;;  %v79_v38 = vld [vmem:[%s2307_s0 + $0x208] sm:$0xff] }
   0xe   :  { %1335 = vmatprep.mubr.msk.f32.mxu1 %vm119_vm1, %v66_v12  ;;  %v32_v39 = vld [vmem:[%s2307_s0 + $0x90] sm:$0xff]  ;;  %v33_v41 = vld [vmem:[%s2307_s0 + $0x98] sm:$0xff]  ;;  %v34_v43 = vld [vmem:[%s2307_s0 + $0xa0] sm:$0xff] }
   0xf   :  { %v80_v40 = vld [vmem:[%s2307_s0 + $0x210] sm:$0xff]  ;;  %v81_v42 = vld [vmem:[%s2307_s0 + $0x218] sm:$0xff]  ;;  %v82_v44 = vld [vmem:[%s2307_s0 + $0x220] sm:$0xff] }
  0x10   :  { %1264 = vmatmul.mubr.msk.f32.gmra.mrb[4].mxu0 %vm119_vm1, %v19_v13  ;;  %v35_v45 = vld [vmem:[%s2307_s0 + $0xa8] sm:$0xff]  ;;  %v36_v47 = vld [vmem:[%s2307_s0 + $0xb0] sm:$0xff]  ;;  %v37_v49 = vld [vmem:[%s2307_s0 + $0xb8] sm:$0xff] }
  0x11   :  { %1336 = vmatmul.mubr.msk.f32.gmra.mrb[4].mxu1 %vm119_vm1, %v67_v14  ;;  %1266 = vmatprep.mubr.msk.f32.mxu0 %vm119_vm1, %v20_v15  ;;  %v83_v46 = vld [vmem:[%s2307_s0 + $0x228] sm:$0xff]  ;;  %v84_v48 = vld [vmem:[%s2307_s0 + $0x230] sm:$0xff]  ;;  %v85_v50 = vld [vmem:[%s2307_s0 + $0x238] sm:$0xff] }
  0x12   :  { %1338 = vmatprep.mubr.msk.f32.mxu1 %vm119_vm1, %v68_v16  ;;  %v38_v51 = vld [vmem:[%s2307_s0 + $0xc0] sm:$0xff]  ;;  %v39_v53 = vld [vmem:[%s2307_s0 + $0xc8] sm:$0xff]  ;;  %v40_v55 = vld [vmem:[%s2307_s0 + $0xd0] sm:$0xff] }
  0x13   :  { %v86_v52 = vld [vmem:[%s2307_s0 + $0x240] sm:$0xff]  ;;  %v87_v54 = vld [vmem:[%s2307_s0 + $0x248] sm:$0xff]  ;;  %v88_v56 = vld [vmem:[%s2307_s0 + $0x250] sm:$0xff] }
  0x14   :  { %1267 = vmatmul.mubr.msk.f32.gmra.mrb[6].mxu0 %vm119_vm1, %v21_v17  ;;  %v41_v57 = vld [vmem:[%s2307_s0 + $0xd8] sm:$0xff]  ;;  %v42_v59 = vld [vmem:[%s2307_s0 + $0xe0] sm:$0xff]  ;;  %v43_v61 = vld [vmem:[%s2307_s0 + $0xe8] sm:$0xff] }
  0x15   :  { %1339 = vmatmul.mubr.msk.f32.gmra.mrb[6].mxu1 %vm119_vm1, %v69_v18  ;;  %1269 = vmatprep.mubr.msk.f32.mxu0 %vm119_vm1, %v22_v19  ;;  %v89_v58 = vld [vmem:[%s2307_s0 + $0x258] sm:$0xff]  ;;  %v90_v60 = vld [vmem:[%s2307_s0 + $0x260] sm:$0xff]  ;;  %v91_v62 = vld [vmem:[%s2307_s0 + $0x268] sm:$0xff] }
  0x16   :  { %1341 = vmatprep.mubr.msk.f32.mxu1 %vm119_vm1, %v70_v20  ;;  %v44_v63 = vld [vmem:[%s2307_s0 + $0xf0] sm:$0xff]  ;;  %v45_v1 = vld [vmem:[%s2307_s0 + $0xf8] sm:$0xff]  ;;  %v46_v3 = vld [vmem:[%s2307_s0 + $0x100] sm:$0xff] }
  0x17   :  { %v92_v0 = vld [vmem:[%s2307_s0 + $0x270] sm:$0xff]  ;;  %v93_v2 = vld [vmem:[%s2307_s0 + $0x278] sm:$0xff]  ;;  %v94_v4 = vld [vmem:[%s2307_s0 + $0x280] sm:$0xff] }
  0x18   :  { %1270 = vmatmul.mubr.msk.f32.gmra.mrb[8].mxu0 %vm119_vm1, %v23_v21  ;;  %v47_v5 = vld [vmem:[%s2307_s0 + $0x108] sm:$0xff]  ;;  %v48_v7 = vld [vmem:[%s2307_s0 + $0x110] sm:$0xff]  ;;  %v49_v9 = vld [vmem:[%s2307_s0 + $0x118] sm:$0xff] }
  0x19   :  { %1342 = vmatmul.mubr.msk.f32.gmra.mrb[8].mxu1 %vm119_vm1, %v71_v22  ;;  %1272 = vmatprep.mubr.msk.f32.mxu0 %vm119_vm1, %v24_v23  ;;  %v95_v6 = vld [vmem:[%s2307_s0 + $0x288] sm:$0xff]  ;;  %v96_v8 = vld [vmem:[%s2307_s0 + $0x290] sm:$0xff]  ;;  %v97_v10 = vld [vmem:[%s2307_s0 + $0x298] sm:$0xff] }
  0x1a   :  { %1344 = vmatprep.mubr.msk.f32.mxu1 %vm119_vm1, %v72_v24  ;;  %v50_v11 = vld [vmem:[%s2307_s0 + $0x120] sm:$0xff]  ;;  %v51_v13 = vld [vmem:[%s2307_s0 + $0x128] sm:$0xff]  ;;  %v52_v15 = vld [vmem:[%s2307_s0 + $0x130] sm:$0xff] }
  0x1b   :  { %v98_v12 = vld [vmem:[%s2307_s0 + $0x2a0] sm:$0xff]  ;;  %v99_v14 = vld [vmem:[%s2307_s0 + $0x2a8] sm:$0xff]  ;;  %v100_v16 = vld [vmem:[%s2307_s0 + $0x2b0] sm:$0xff] }
  0x1c   :  { %1273 = vmatmul.mubr.msk.f32.gmra.mrb[10].mxu0 %vm119_vm1, %v25_v25  ;;  %v53_v17 = vld [vmem:[%s2307_s0 + $0x138] sm:$0xff]  ;;  %v54_v19 = vld [vmem:[%s2307_s0 + $0x140] sm:$0xff]  ;;  %v55_v21 = vld [vmem:[%s2307_s0 + $0x148] sm:$0xff] }
  0x1d   :  { %1345 = vmatmul.mubr.msk.f32.gmra.mrb[10].mxu1 %vm119_vm1, %v73_v26  ;;  %1275 = vmatprep.mubr.msk.f32.mxu0 %vm119_vm1, %v26_v27  ;;  %v101_v18 = vld [vmem:[%s2307_s0 + $0x2b8] sm:$0xff]  ;;  %v102_v20 = vld [vmem:[%s2307_s0 + $0x2c0] sm:$0xff]  ;;  %v103_v22 = vld [vmem:[%s2307_s0 + $0x2c8] sm:$0xff] }
  0x1e   :  { %1347 = vmatprep.mubr.msk.f32.mxu1 %vm119_vm1, %v74_v28  ;;  %v56_v23 = vld [vmem:[%s2307_s0 + $0x150] sm:$0xff]  ;;  %v57_v25 = vld [vmem:[%s2307_s0 + $0x158] sm:$0xff]  ;;  %v58_v27 = vld [vmem:[%s2307_s0 + $0x160] sm:$0xff] }
  0x1f   :  { %v104_v24 = vld [vmem:[%s2307_s0 + $0x2d0] sm:$0xff]  ;;  %v105_v26 = vld [vmem:[%s2307_s0 + $0x2d8] sm:$0xff]  ;;  %v106_v28 = vld [vmem:[%s2307_s0 + $0x2e0] sm:$0xff] }
  0x20   :  { %1276 = vmatmul.mubr.msk.f32.gmra.mrb[12].mxu0 %vm119_vm1, %v27_v29  ;;  %v59_v29 = vld [vmem:[%s2307_s0 + $0x168] sm:$0xff] }
  0x21   :  { %1348 = vmatmul.mubr.msk.f32.gmra.mrb[12].mxu1 %vm119_vm1, %v75_v30  ;;  %1278 = vmatprep.mubr.msk.f32.mxu0 %vm119_vm1, %v28_v31  ;;  %v107_v30 = vld [vmem:[%s2307_s0 + $0x2e8] sm:$0xff]  ;;  %v60_v31 = vld [vmem:[%s2307_s0 + $0x170] sm:$0xff] }
  0x22   :  { %1350 = vmatprep.mubr.msk.f32.mxu1 %vm119_vm1, %v76_v32  ;;  %v108_v32 = vld [vmem:[%s2307_s0 + $0x2f0] sm:$0xff] }
  0x24   :  { %1279 = vmatmul.mubr.msk.f32.gmra.mrb[14].mxu0 %vm119_vm1, %v29_v33  ;;  %v61_v33 = vld [vmem:[%s2307_s0 + $0x178] sm:$0xff] }
  0x25   :  { %1351 = vmatmul.mubr.msk.f32.gmra.mrb[14].mxu1 %vm119_vm1, %v77_v34  ;;  %1281 = vmatprep.mubr.msk.f32.mxu0 %vm119_vm1, %v30_v35  ;;  %v109_v34 = vld [vmem:[%s2307_s0 + $0x2f8] sm:$0xff]  ;;  %v1824_v35 = vld [vmem:[%s2308_s2] ss:$0 sm:$0xff] }
  0x26   :  { %1353 = vmatprep.mubr.msk.f32.mxu1 %vm119_vm1, %v78_v36 }
  0x28   :  { %1282 = vmatmul.mubr.msk.f32.gmra.mrb[16].mxu0 %vm119_vm1, %v31_v37 }
  0x29   :  { %1354 = vmatmul.mubr.msk.f32.gmra.mrb[16].mxu1 %vm119_vm1, %v79_v38  ;;  %1284 = vmatprep.mubr.msk.f32.mxu0 %vm119_vm1, %v32_v39 }
  0x2a   :  { %1356 = vmatprep.mubr.msk.f32.mxu1 %vm119_vm1, %v80_v40 }
  0x2c   :  { %1285 = vmatmul.mubr.msk.f32.gmra.mrb[18].mxu0 %vm119_vm1, %v33_v41 }
  0x2d   :  { %1357 = vmatmul.mubr.msk.f32.gmra.mrb[18].mxu1 %vm119_vm1, %v81_v42  ;;  %1287 = vmatprep.mubr.msk.f32.mxu0 %vm119_vm1, %v34_v43 }
  0x2e   :  { %1359 = vmatprep.mubr.msk.f32.mxu1 %vm119_vm1, %v82_v44 }
  0x30   :  { %1288 = vmatmul.mubr.msk.f32.gmra.mrb[20].mxu0 %vm119_vm1, %v35_v45 }
  0x31   :  { %1360 = vmatmul.mubr.msk.f32.gmra.mrb[20].mxu1 %vm119_vm1, %v83_v46  ;;  %1290 = vmatprep.mubr.msk.f32.mxu0 %vm119_vm1, %v36_v47 }
  0x32   :  { %1362 = vmatprep.mubr.msk.f32.mxu1 %vm119_vm1, %v84_v48 }
  0x34   :  { %1291 = vmatmul.mubr.msk.f32.gmra.mrb[22].mxu0 %vm119_vm1, %v37_v49 }
  0x35   :  { %1363 = vmatmul.mubr.msk.f32.gmra.mrb[22].mxu1 %vm119_vm1, %v85_v50  ;;  %1293 = vmatprep.mubr.msk.f32.mxu0 %vm119_vm1, %v38_v51 }
  0x36   :  { %1365 = vmatprep.mubr.msk.f32.mxu1 %vm119_vm1, %v86_v52 }
  0x38   :  { %1294 = vmatmul.mubr.msk.f32.gmra.mrb[24].mxu0 %vm119_vm1, %v39_v53 }
  0x39   :  { %1366 = vmatmul.mubr.msk.f32.gmra.mrb[24].mxu1 %vm119_vm1, %v87_v54  ;;  %1296 = vmatprep.mubr.msk.f32.mxu0 %vm119_vm1, %v40_v55 }
  0x3a   :  { %1368 = vmatprep.mubr.msk.f32.mxu1 %vm119_vm1, %v88_v56 }
  0x3c   :  { %1297 = vmatmul.mubr.msk.f32.gmra.mrb[26].mxu0 %vm119_vm1, %v41_v57 }
  0x3d   :  { %1369 = vmatmul.mubr.msk.f32.gmra.mrb[26].mxu1 %vm119_vm1, %v89_v58  ;;  %1299 = vmatprep.mubr.msk.f32.mxu0 %vm119_vm1, %v42_v59 }
  0x3e   :  { %1371 = vmatprep.mubr.msk.f32.mxu1 %vm119_vm1, %v90_v60 }
  0x40   :  { %1300 = vmatmul.mubr.msk.f32.gmra.mrb[28].mxu0 %vm119_vm1, %v43_v61 }
  0x41   :  { %1372 = vmatmul.mubr.msk.f32.gmra.mrb[28].mxu1 %vm119_vm1, %v91_v62  ;;  %1302 = vmatprep.mubr.msk.f32.mxu0 %vm119_vm1, %v44_v63 }
  0x42   :  { %1374 = vmatprep.mubr.msk.f32.mxu1 %vm119_vm1, %v92_v0 }
  0x44   :  { %1303 = vmatmul.mubr.msk.f32.gmra.mrb[30].mxu0 %vm119_vm1, %v45_v1 }
  0x45   :  { %1375 = vmatmul.mubr.msk.f32.gmra.mrb[30].mxu1 %vm119_vm1, %v93_v2  ;;  %1305 = vmatprep.mubr.msk.f32.mxu0 %vm119_vm1, %v46_v3 }
  0x46   :  { %1377 = vmatprep.mubr.msk.f32.mxu1 %vm119_vm1, %v94_v4 }
  0x48   :  { %1306 = vmatmul.mubr.msk.f32.gmra.mrb[32].mxu0 %vm119_vm1, %v47_v5 }
  0x49   :  { %1378 = vmatmul.mubr.msk.f32.gmra.mrb[32].mxu1 %vm119_vm1, %v95_v6  ;;  %1308 = vmatprep.mubr.msk.f32.mxu0 %vm119_vm1, %v48_v7 }
  0x4a   :  { %1380 = vmatprep.mubr.msk.f32.mxu1 %vm119_vm1, %v96_v8 }
  0x4c   :  { %1309 = vmatmul.mubr.msk.f32.gmra.mrb[34].mxu0 %vm119_vm1, %v49_v9 }
  0x4d   :  { %1381 = vmatmul.mubr.msk.f32.gmra.mrb[34].mxu1 %vm119_vm1, %v97_v10  ;;  %1311 = vmatprep.mubr.msk.f32.mxu0 %vm119_vm1, %v50_v11 }
  0x4e   :  { %1383 = vmatprep.mubr.msk.f32.mxu1 %vm119_vm1, %v98_v12 }
  0x50   :  { %1312 = vmatmul.mubr.msk.f32.gmra.mrb[36].mxu0 %vm119_vm1, %v51_v13 }
  0x51   :  { %1384 = vmatmul.mubr.msk.f32.gmra.mrb[36].mxu1 %vm119_vm1, %v99_v14  ;;  %1314 = vmatprep.mubr.msk.f32.mxu0 %vm119_vm1, %v52_v15 }
  0x52   :  { %1386 = vmatprep.mubr.msk.f32.mxu1 %vm119_vm1, %v100_v16 }
  0x54   :  { %1315 = vmatmul.mubr.msk.f32.gmra.mrb[38].mxu0 %vm119_vm1, %v53_v17 }
  0x55   :  { %1387 = vmatmul.mubr.msk.f32.gmra.mrb[38].mxu1 %vm119_vm1, %v101_v18  ;;  %1317 = vmatprep.mubr.msk.f32.mxu0 %vm119_vm1, %v54_v19 }
  0x56   :  { %1389 = vmatprep.mubr.msk.f32.mxu1 %vm119_vm1, %v102_v20 }
  0x58   :  { %1318 = vmatmul.mubr.msk.f32.gmra.mrb[40].mxu0 %vm119_vm1, %v55_v21 }
  0x59   :  { %1390 = vmatmul.mubr.msk.f32.gmra.mrb[40].mxu1 %vm119_vm1, %v103_v22  ;;  %1320 = vmatprep.mubr.msk.f32.mxu0 %vm119_vm1, %v56_v23 }
  0x5a   :  { %1392 = vmatprep.mubr.msk.f32.mxu1 %vm119_vm1, %v104_v24 }
  0x5c   :  { %1321 = vmatmul.mubr.msk.f32.gmra.mrb[42].mxu0 %vm119_vm1, %v57_v25 }
  0x5d   :  { %1393 = vmatmul.mubr.msk.f32.gmra.mrb[42].mxu1 %vm119_vm1, %v105_v26  ;;  %1323 = vmatprep.mubr.msk.f32.mxu0 %vm119_vm1, %v58_v27 }
  0x5e   :  { %1395 = vmatprep.mubr.msk.f32.mxu1 %vm119_vm1, %v106_v28 }
  0x60   :  { %1324 = vmatmul.mubr.msk.f32.gmra.mrb[44].mxu0 %vm119_vm1, %v59_v29 }
  0x61   :  { %1396 = vmatmul.mubr.msk.f32.gmra.mrb[44].mxu1 %vm119_vm1, %v107_v30  ;;  %1326 = vmatprep.mubr.msk.f32.mxu0 %vm119_vm1, %v60_v31 }
  0x62   :  { %1398 = vmatprep.mubr.msk.f32.mxu1 %vm119_vm1, %v108_v32 }
  0x64   :  { %1327 = vmatmul.mubr.msk.f32.gmra.mrb[46].mxu0 %vm119_vm1, %v61_v33 }
  0x65   :  { %1399 = vmatmul.mubr.msk.f32.gmra.mrb[46].mxu1 %vm119_vm1, %v109_v34 }
  0xdb   :  { %v1259_v36 = vpop.f32.mrb[0].mxu0 }
  0xdc   :  { %v1331_v37 = vpop.f32.mrb[0].mxu1  ;;  %v484_v38 = vadd.f32 %v1259_v36, %v1824_v35  ;;  %v478_v40 = vpop.f32.mrb[1].mxu0 }
  0xdd   :  { %v724_v39 = vadd.f32 %v1331_v37, %v1824_v35  ;;  %v718_v41 = vpop.f32.mrb[1].mxu1  ;;  %v479_v42 = vadd.f32 %v1824_v35, %v478_v40 }
  0xde   :  { %v719_v43 = vadd.f32 %v1824_v35, %v718_v41  ;;  %958 = vst.msk [vmem:[%s2309_s3 + $0x8] sm:$0xff] %vm119_vm1, %v484_v38 }
  0xdf   :  { %1006 = vst.msk [vmem:[%s2309_s3 + $0x188] sm:$0xff] %vm119_vm1, %v724_v39  ;;  %957 = vst.msk [vmem:[%s2309_s3] sm:$0xff] %vm119_vm1, %v479_v42  ;;  %v1262_v44 = vpop.f32.mrb[2].mxu0 }
  0xe0   :  { %1005 = vst.msk [vmem:[%s2309_s3 + $0x180] sm:$0xff] %vm119_vm1, %v719_v43  ;;  %v1334_v45 = vpop.f32.mrb[2].mxu1  ;;  %v494_v46 = vadd.f32 %v1262_v44, %v1824_v35  ;;  %v488_v48 = vpop.f32.mrb[3].mxu0 }
  0xe1   :  { %v734_v47 = vadd.f32 %v1334_v45, %v1824_v35  ;;  %v728_v49 = vpop.f32.mrb[3].mxu1  ;;  %v489_v50 = vadd.f32 %v1824_v35, %v488_v48 }
  0xe2   :  { %v729_v51 = vadd.f32 %v1824_v35, %v728_v49  ;;  %960 = vst.msk [vmem:[%s2309_s3 + $0x18] sm:$0xff] %vm119_vm1, %v494_v46 }
  0xe3   :  { %1008 = vst.msk [vmem:[%s2309_s3 + $0x198] sm:$0xff] %vm119_vm1, %v734_v47  ;;  %959 = vst.msk [vmem:[%s2309_s3 + $0x10] sm:$0xff] %vm119_vm1, %v489_v50  ;;  %v1265_v52 = vpop.f32.mrb[4].mxu0 }
  0xe4   :  { %1007 = vst.msk [vmem:[%s2309_s3 + $0x190] sm:$0xff] %vm119_vm1, %v729_v51  ;;  %v1337_v53 = vpop.f32.mrb[4].mxu1  ;;  %v504_v54 = vadd.f32 %v1265_v52, %v1824_v35  ;;  %v498_v56 = vpop.f32.mrb[5].mxu0 }
  0xe5   :  { %v744_v55 = vadd.f32 %v1337_v53, %v1824_v35  ;;  %v738_v57 = vpop.f32.mrb[5].mxu1  ;;  %v499_v58 = vadd.f32 %v1824_v35, %v498_v56 }
  0xe6   :  { %v739_v59 = vadd.f32 %v1824_v35, %v738_v57  ;;  %962 = vst.msk [vmem:[%s2309_s3 + $0x28] sm:$0xff] %vm119_vm1, %v504_v54 }
  0xe7   :  { %1010 = vst.msk [vmem:[%s2309_s3 + $0x1a8] sm:$0xff] %vm119_vm1, %v744_v55  ;;  %961 = vst.msk [vmem:[%s2309_s3 + $0x20] sm:$0xff] %vm119_vm1, %v499_v58  ;;  %v1268_v60 = vpop.f32.mrb[6].mxu0 }
  0xe8   :  { %1009 = vst.msk [vmem:[%s2309_s3 + $0x1a0] sm:$0xff] %vm119_vm1, %v739_v59  ;;  %v1340_v61 = vpop.f32.mrb[6].mxu1  ;;  %v514_v62 = vadd.f32 %v1268_v60, %v1824_v35  ;;  %v508_v0 = vpop.f32.mrb[7].mxu0 }
  0xe9   :  { %v754_v63 = vadd.f32 %v1340_v61, %v1824_v35  ;;  %v748_v1 = vpop.f32.mrb[7].mxu1  ;;  %v509_v2 = vadd.f32 %v1824_v35, %v508_v0 }
  0xea   :  { %v749_v3 = vadd.f32 %v1824_v35, %v748_v1  ;;  %964 = vst.msk [vmem:[%s2309_s3 + $0x38] sm:$0xff] %vm119_vm1, %v514_v62 }
  0xeb   :  { %1012 = vst.msk [vmem:[%s2309_s3 + $0x1b8] sm:$0xff] %vm119_vm1, %v754_v63  ;;  %963 = vst.msk [vmem:[%s2309_s3 + $0x30] sm:$0xff] %vm119_vm1, %v509_v2  ;;  %v1271_v4 = vpop.f32.mrb[8].mxu0 }
  0xec   :  { %1011 = vst.msk [vmem:[%s2309_s3 + $0x1b0] sm:$0xff] %vm119_vm1, %v749_v3  ;;  %v1343_v5 = vpop.f32.mrb[8].mxu1  ;;  %v524_v6 = vadd.f32 %v1271_v4, %v1824_v35  ;;  %v518_v8 = vpop.f32.mrb[9].mxu0 }
  0xed   :  { %v764_v7 = vadd.f32 %v1343_v5, %v1824_v35  ;;  %v758_v9 = vpop.f32.mrb[9].mxu1  ;;  %v519_v10 = vadd.f32 %v1824_v35, %v518_v8 }
  0xee   :  { %v759_v11 = vadd.f32 %v1824_v35, %v758_v9  ;;  %966 = vst.msk [vmem:[%s2309_s3 + $0x48] sm:$0xff] %vm119_vm1, %v524_v6 }
  0xef   :  { %1014 = vst.msk [vmem:[%s2309_s3 + $0x1c8] sm:$0xff] %vm119_vm1, %v764_v7  ;;  %965 = vst.msk [vmem:[%s2309_s3 + $0x40] sm:$0xff] %vm119_vm1, %v519_v10  ;;  %v1274_v12 = vpop.f32.mrb[10].mxu0 }
  0xf0   :  { %1013 = vst.msk [vmem:[%s2309_s3 + $0x1c0] sm:$0xff] %vm119_vm1, %v759_v11  ;;  %v1346_v13 = vpop.f32.mrb[10].mxu1  ;;  %v534_v14 = vadd.f32 %v1274_v12, %v1824_v35  ;;  %v528_v16 = vpop.f32.mrb[11].mxu0 }
  0xf1   :  { %v774_v15 = vadd.f32 %v1346_v13, %v1824_v35  ;;  %v768_v17 = vpop.f32.mrb[11].mxu1  ;;  %v529_v18 = vadd.f32 %v1824_v35, %v528_v16 }
  0xf2   :  { %v769_v19 = vadd.f32 %v1824_v35, %v768_v17  ;;  %968 = vst.msk [vmem:[%s2309_s3 + $0x58] sm:$0xff] %vm119_vm1, %v534_v14 }
  0xf3   :  { %1016 = vst.msk [vmem:[%s2309_s3 + $0x1d8] sm:$0xff] %vm119_vm1, %v774_v15  ;;  %967 = vst.msk [vmem:[%s2309_s3 + $0x50] sm:$0xff] %vm119_vm1, %v529_v18  ;;  %v1277_v20 = vpop.f32.mrb[12].mxu0 }
  0xf4   :  { %1015 = vst.msk [vmem:[%s2309_s3 + $0x1d0] sm:$0xff] %vm119_vm1, %v769_v19  ;;  %v1349_v21 = vpop.f32.mrb[12].mxu1  ;;  %v544_v22 = vadd.f32 %v1277_v20, %v1824_v35  ;;  %v538_v24 = vpop.f32.mrb[13].mxu0 }
  0xf5   :  { %v784_v23 = vadd.f32 %v1349_v21, %v1824_v35  ;;  %v778_v25 = vpop.f32.mrb[13].mxu1  ;;  %v539_v26 = vadd.f32 %v1824_v35, %v538_v24 }
  0xf6   :  { %v779_v27 = vadd.f32 %v1824_v35, %v778_v25  ;;  %970 = vst.msk [vmem:[%s2309_s3 + $0x68] sm:$0xff] %vm119_vm1, %v544_v22 }
  0xf7   :  { %1018 = vst.msk [vmem:[%s2309_s3 + $0x1e8] sm:$0xff] %vm119_vm1, %v784_v23  ;;  %969 = vst.msk [vmem:[%s2309_s3 + $0x60] sm:$0xff] %vm119_vm1, %v539_v26  ;;  %v1280_v28 = vpop.f32.mrb[14].mxu0 }
  0xf8   :  { %1017 = vst.msk [vmem:[%s2309_s3 + $0x1e0] sm:$0xff] %vm119_vm1, %v779_v27  ;;  %v1352_v29 = vpop.f32.mrb[14].mxu1  ;;  %v554_v30 = vadd.f32 %v1280_v28, %v1824_v35  ;;  %v548_v32 = vpop.f32.mrb[15].mxu0 }
  0xf9   :  { %v794_v31 = vadd.f32 %v1352_v29, %v1824_v35  ;;  %v788_v33 = vpop.f32.mrb[15].mxu1  ;;  %v549_v34 = vadd.f32 %v1824_v35, %v548_v32 }
  0xfa   :  { %v789_v36 = vadd.f32 %v1824_v35, %v788_v33  ;;  %972 = vst.msk [vmem:[%s2309_s3 + $0x78] sm:$0xff] %vm119_vm1, %v554_v30 }
  0xfb   :  { %1020 = vst.msk [vmem:[%s2309_s3 + $0x1f8] sm:$0xff] %vm119_vm1, %v794_v31  ;;  %971 = vst.msk [vmem:[%s2309_s3 + $0x70] sm:$0xff] %vm119_vm1, %v549_v34  ;;  %v1283_v37 = vpop.f32.mrb[16].mxu0 }
  0xfc   :  { %1019 = vst.msk [vmem:[%s2309_s3 + $0x1f0] sm:$0xff] %vm119_vm1, %v789_v36  ;;  %v1355_v38 = vpop.f32.mrb[16].mxu1  ;;  %v564_v39 = vadd.f32 %v1283_v37, %v1824_v35  ;;  %v558_v41 = vpop.f32.mrb[17].mxu0 }
  0xfd   :  { %v804_v40 = vadd.f32 %v1355_v38, %v1824_v35  ;;  %v798_v42 = vpop.f32.mrb[17].mxu1  ;;  %v559_v43 = vadd.f32 %v1824_v35, %v558_v41 }
  0xfe   :  { %v799_v44 = vadd.f32 %v1824_v35, %v798_v42  ;;  %974 = vst.msk [vmem:[%s2309_s3 + $0x88] sm:$0xff] %vm119_vm1, %v564_v39 }
  0xff   :  { %1022 = vst.msk [vmem:[%s2309_s3 + $0x208] sm:$0xff] %vm119_vm1, %v804_v40  ;;  %973 = vst.msk [vmem:[%s2309_s3 + $0x80] sm:$0xff] %vm119_vm1, %v559_v43  ;;  %v1286_v45 = vpop.f32.mrb[18].mxu0 }
 0x100   :  { %1021 = vst.msk [vmem:[%s2309_s3 + $0x200] sm:$0xff] %vm119_vm1, %v799_v44  ;;  %v1358_v46 = vpop.f32.mrb[18].mxu1  ;;  %v574_v47 = vadd.f32 %v1286_v45, %v1824_v35  ;;  %v568_v49 = vpop.f32.mrb[19].mxu0 }
 0x101   :  { %v814_v48 = vadd.f32 %v1358_v46, %v1824_v35  ;;  %v808_v50 = vpop.f32.mrb[19].mxu1  ;;  %v569_v51 = vadd.f32 %v1824_v35, %v568_v49 }
 0x102   :  { %v809_v52 = vadd.f32 %v1824_v35, %v808_v50  ;;  %976 = vst.msk [vmem:[%s2309_s3 + $0x98] sm:$0xff] %vm119_vm1, %v574_v47 }
 0x103   :  { %1024 = vst.msk [vmem:[%s2309_s3 + $0x218] sm:$0xff] %vm119_vm1, %v814_v48  ;;  %975 = vst.msk [vmem:[%s2309_s3 + $0x90] sm:$0xff] %vm119_vm1, %v569_v51  ;;  %v1289_v53 = vpop.f32.mrb[20].mxu0 }
 0x104   :  { %1023 = vst.msk [vmem:[%s2309_s3 + $0x210] sm:$0xff] %vm119_vm1, %v809_v52  ;;  %v1361_v54 = vpop.f32.mrb[20].mxu1  ;;  %v584_v55 = vadd.f32 %v1289_v53, %v1824_v35  ;;  %v578_v57 = vpop.f32.mrb[21].mxu0 }
 0x105   :  { %v824_v56 = vadd.f32 %v1361_v54, %v1824_v35  ;;  %v818_v58 = vpop.f32.mrb[21].mxu1  ;;  %v579_v59 = vadd.f32 %v1824_v35, %v578_v57 }
 0x106   :  { %v819_v60 = vadd.f32 %v1824_v35, %v818_v58  ;;  %978 = vst.msk [vmem:[%s2309_s3 + $0xa8] sm:$0xff] %vm119_vm1, %v584_v55 }
 0x107   :  { %1026 = vst.msk [vmem:[%s2309_s3 + $0x228] sm:$0xff] %vm119_vm1, %v824_v56  ;;  %977 = vst.msk [vmem:[%s2309_s3 + $0xa0] sm:$0xff] %vm119_vm1, %v579_v59  ;;  %v1292_v61 = vpop.f32.mrb[22].mxu0 }
 0x108   :  { %1025 = vst.msk [vmem:[%s2309_s3 + $0x220] sm:$0xff] %vm119_vm1, %v819_v60  ;;  %v1364_v62 = vpop.f32.mrb[22].mxu1  ;;  %v594_v63 = vadd.f32 %v1292_v61, %v1824_v35  ;;  %v588_v1 = vpop.f32.mrb[23].mxu0 }
 0x109   :  { %v834_v0 = vadd.f32 %v1364_v62, %v1824_v35  ;;  %v828_v2 = vpop.f32.mrb[23].mxu1  ;;  %v589_v3 = vadd.f32 %v1824_v35, %v588_v1 }
 0x10a   :  { %v829_v4 = vadd.f32 %v1824_v35, %v828_v2  ;;  %980 = vst.msk [vmem:[%s2309_s3 + $0xb8] sm:$0xff] %vm119_vm1, %v594_v63 }
 0x10b   :  { %1028 = vst.msk [vmem:[%s2309_s3 + $0x238] sm:$0xff] %vm119_vm1, %v834_v0  ;;  %979 = vst.msk [vmem:[%s2309_s3 + $0xb0] sm:$0xff] %vm119_vm1, %v589_v3  ;;  %v1295_v5 = vpop.f32.mrb[24].mxu0 }
 0x10c   :  { %1027 = vst.msk [vmem:[%s2309_s3 + $0x230] sm:$0xff] %vm119_vm1, %v829_v4  ;;  %v1367_v6 = vpop.f32.mrb[24].mxu1  ;;  %v604_v7 = vadd.f32 %v1295_v5, %v1824_v35  ;;  %v598_v9 = vpop.f32.mrb[25].mxu0 }
 0x10d   :  { %v844_v8 = vadd.f32 %v1367_v6, %v1824_v35  ;;  %v838_v10 = vpop.f32.mrb[25].mxu1  ;;  %v599_v11 = vadd.f32 %v1824_v35, %v598_v9 }
 0x10e   :  { %v839_v12 = vadd.f32 %v1824_v35, %v838_v10  ;;  %982 = vst.msk [vmem:[%s2309_s3 + $0xc8] sm:$0xff] %vm119_vm1, %v604_v7 }
 0x10f   :  { %1030 = vst.msk [vmem:[%s2309_s3 + $0x248] sm:$0xff] %vm119_vm1, %v844_v8  ;;  %981 = vst.msk [vmem:[%s2309_s3 + $0xc0] sm:$0xff] %vm119_vm1, %v599_v11  ;;  %v1298_v13 = vpop.f32.mrb[26].mxu0 }
 0x110   :  { %1029 = vst.msk [vmem:[%s2309_s3 + $0x240] sm:$0xff] %vm119_vm1, %v839_v12  ;;  %v1370_v14 = vpop.f32.mrb[26].mxu1  ;;  %v614_v15 = vadd.f32 %v1298_v13, %v1824_v35  ;;  %v608_v17 = vpop.f32.mrb[27].mxu0 }
 0x111   :  { %v854_v16 = vadd.f32 %v1370_v14, %v1824_v35  ;;  %v848_v18 = vpop.f32.mrb[27].mxu1  ;;  %v609_v19 = vadd.f32 %v1824_v35, %v608_v17 }
 0x112   :  { %v849_v20 = vadd.f32 %v1824_v35, %v848_v18  ;;  %984 = vst.msk [vmem:[%s2309_s3 + $0xd8] sm:$0xff] %vm119_vm1, %v614_v15 }
 0x113   :  { %1032 = vst.msk [vmem:[%s2309_s3 + $0x258] sm:$0xff] %vm119_vm1, %v854_v16  ;;  %983 = vst.msk [vmem:[%s2309_s3 + $0xd0] sm:$0xff] %vm119_vm1, %v609_v19  ;;  %v1301_v21 = vpop.f32.mrb[28].mxu0 }
 0x114   :  { %1031 = vst.msk [vmem:[%s2309_s3 + $0x250] sm:$0xff] %vm119_vm1, %v849_v20  ;;  %v1373_v22 = vpop.f32.mrb[28].mxu1  ;;  %v624_v23 = vadd.f32 %v1301_v21, %v1824_v35  ;;  %v618_v25 = vpop.f32.mrb[29].mxu0 }
 0x115   :  { %v864_v24 = vadd.f32 %v1373_v22, %v1824_v35  ;;  %v858_v26 = vpop.f32.mrb[29].mxu1  ;;  %v619_v27 = vadd.f32 %v1824_v35, %v618_v25 }
 0x116   :  { %v859_v28 = vadd.f32 %v1824_v35, %v858_v26  ;;  %986 = vst.msk [vmem:[%s2309_s3 + $0xe8] sm:$0xff] %vm119_vm1, %v624_v23 }
 0x117   :  { %1034 = vst.msk [vmem:[%s2309_s3 + $0x268] sm:$0xff] %vm119_vm1, %v864_v24  ;;  %985 = vst.msk [vmem:[%s2309_s3 + $0xe0] sm:$0xff] %vm119_vm1, %v619_v27  ;;  %v1304_v29 = vpop.f32.mrb[30].mxu0 }
 0x118   :  { %1033 = vst.msk [vmem:[%s2309_s3 + $0x260] sm:$0xff] %vm119_vm1, %v859_v28  ;;  %v1376_v30 = vpop.f32.mrb[30].mxu1  ;;  %v634_v31 = vadd.f32 %v1304_v29, %v1824_v35  ;;  %v628_v33 = vpop.f32.mrb[31].mxu0 }
 0x119   :  { %v874_v32 = vadd.f32 %v1376_v30, %v1824_v35  ;;  %v868_v34 = vpop.f32.mrb[31].mxu1  ;;  %v629_v36 = vadd.f32 %v1824_v35, %v628_v33 }
 0x11a   :  { %v869_v37 = vadd.f32 %v1824_v35, %v868_v34  ;;  %988 = vst.msk [vmem:[%s2309_s3 + $0xf8] sm:$0xff] %vm119_vm1, %v634_v31 }
 0x11b   :  { %1036 = vst.msk [vmem:[%s2309_s3 + $0x278] sm:$0xff] %vm119_vm1, %v874_v32  ;;  %987 = vst.msk [vmem:[%s2309_s3 + $0xf0] sm:$0xff] %vm119_vm1, %v629_v36  ;;  %v1307_v38 = vpop.f32.mrb[32].mxu0 }
 0x11c   :  { %1035 = vst.msk [vmem:[%s2309_s3 + $0x270] sm:$0xff] %vm119_vm1, %v869_v37  ;;  %v1379_v39 = vpop.f32.mrb[32].mxu1  ;;  %v644_v40 = vadd.f32 %v1307_v38, %v1824_v35  ;;  %v638_v42 = vpop.f32.mrb[33].mxu0 }
 0x11d   :  { %v884_v41 = vadd.f32 %v1379_v39, %v1824_v35  ;;  %v878_v43 = vpop.f32.mrb[33].mxu1  ;;  %v639_v44 = vadd.f32 %v1824_v35, %v638_v42 }
 0x11e   :  { %v879_v45 = vadd.f32 %v1824_v35, %v878_v43  ;;  %990 = vst.msk [vmem:[%s2309_s3 + $0x108] sm:$0xff] %vm119_vm1, %v644_v40 }
 0x11f   :  { %1038 = vst.msk [vmem:[%s2309_s3 + $0x288] sm:$0xff] %vm119_vm1, %v884_v41  ;;  %989 = vst.msk [vmem:[%s2309_s3 + $0x100] sm:$0xff] %vm119_vm1, %v639_v44  ;;  %v1310_v46 = vpop.f32.mrb[34].mxu0 }
 0x120   :  { %1037 = vst.msk [vmem:[%s2309_s3 + $0x280] sm:$0xff] %vm119_vm1, %v879_v45  ;;  %v1382_v47 = vpop.f32.mrb[34].mxu1  ;;  %v654_v48 = vadd.f32 %v1310_v46, %v1824_v35  ;;  %v648_v50 = vpop.f32.mrb[35].mxu0 }
 0x121   :  { %v894_v49 = vadd.f32 %v1382_v47, %v1824_v35  ;;  %v888_v51 = vpop.f32.mrb[35].mxu1  ;;  %v649_v52 = vadd.f32 %v1824_v35, %v648_v50 }
 0x122   :  { %v889_v53 = vadd.f32 %v1824_v35, %v888_v51  ;;  %992 = vst.msk [vmem:[%s2309_s3 + $0x118] sm:$0xff] %vm119_vm1, %v654_v48 }
 0x123   :  { %1040 = vst.msk [vmem:[%s2309_s3 + $0x298] sm:$0xff] %vm119_vm1, %v894_v49  ;;  %991 = vst.msk [vmem:[%s2309_s3 + $0x110] sm:$0xff] %vm119_vm1, %v649_v52  ;;  %v1313_v54 = vpop.f32.mrb[36].mxu0 }
 0x124   :  { %1039 = vst.msk [vmem:[%s2309_s3 + $0x290] sm:$0xff] %vm119_vm1, %v889_v53  ;;  %v1385_v55 = vpop.f32.mrb[36].mxu1  ;;  %v664_v56 = vadd.f32 %v1313_v54, %v1824_v35  ;;  %v658_v58 = vpop.f32.mrb[37].mxu0 }
 0x125   :  { %v904_v57 = vadd.f32 %v1385_v55, %v1824_v35  ;;  %v898_v59 = vpop.f32.mrb[37].mxu1  ;;  %v659_v60 = vadd.f32 %v1824_v35, %v658_v58 }
 0x126   :  { %v899_v61 = vadd.f32 %v1824_v35, %v898_v59  ;;  %994 = vst.msk [vmem:[%s2309_s3 + $0x128] sm:$0xff] %vm119_vm1, %v664_v56 }
 0x127   :  { %1042 = vst.msk [vmem:[%s2309_s3 + $0x2a8] sm:$0xff] %vm119_vm1, %v904_v57  ;;  %993 = vst.msk [vmem:[%s2309_s3 + $0x120] sm:$0xff] %vm119_vm1, %v659_v60  ;;  %v1316_v62 = vpop.f32.mrb[38].mxu0 }
 0x128   :  { %1041 = vst.msk [vmem:[%s2309_s3 + $0x2a0] sm:$0xff] %vm119_vm1, %v899_v61  ;;  %v1388_v63 = vpop.f32.mrb[38].mxu1  ;;  %v674_v0 = vadd.f32 %v1316_v62, %v1824_v35  ;;  %v668_v2 = vpop.f32.mrb[39].mxu0 }
 0x129   :  { %v914_v1 = vadd.f32 %v1388_v63, %v1824_v35  ;;  %v908_v3 = vpop.f32.mrb[39].mxu1  ;;  %v669_v4 = vadd.f32 %v1824_v35, %v668_v2 }
 0x12a   :  { %v909_v5 = vadd.f32 %v1824_v35, %v908_v3  ;;  %996 = vst.msk [vmem:[%s2309_s3 + $0x138] sm:$0xff] %vm119_vm1, %v674_v0 }
 0x12b   :  { %1044 = vst.msk [vmem:[%s2309_s3 + $0x2b8] sm:$0xff] %vm119_vm1, %v914_v1  ;;  %995 = vst.msk [vmem:[%s2309_s3 + $0x130] sm:$0xff] %vm119_vm1, %v669_v4  ;;  %v1319_v6 = vpop.f32.mrb[40].mxu0 }
 0x12c   :  { %1043 = vst.msk [vmem:[%s2309_s3 + $0x2b0] sm:$0xff] %vm119_vm1, %v909_v5  ;;  %v1391_v7 = vpop.f32.mrb[40].mxu1  ;;  %v684_v8 = vadd.f32 %v1319_v6, %v1824_v35  ;;  %v678_v10 = vpop.f32.mrb[41].mxu0 }
 0x12d   :  { %v924_v9 = vadd.f32 %v1391_v7, %v1824_v35  ;;  %v918_v11 = vpop.f32.mrb[41].mxu1  ;;  %v679_v12 = vadd.f32 %v1824_v35, %v678_v10 }
 0x12e   :  { %v919_v13 = vadd.f32 %v1824_v35, %v918_v11  ;;  %998 = vst.msk [vmem:[%s2309_s3 + $0x148] sm:$0xff] %vm119_vm1, %v684_v8 }
 0x12f   :  { %1046 = vst.msk [vmem:[%s2309_s3 + $0x2c8] sm:$0xff] %vm119_vm1, %v924_v9  ;;  %997 = vst.msk [vmem:[%s2309_s3 + $0x140] sm:$0xff] %vm119_vm1, %v679_v12  ;;  %v1322_v14 = vpop.f32.mrb[42].mxu0 }
 0x130   :  { %1045 = vst.msk [vmem:[%s2309_s3 + $0x2c0] sm:$0xff] %vm119_vm1, %v919_v13  ;;  %v1394_v15 = vpop.f32.mrb[42].mxu1  ;;  %v694_v16 = vadd.f32 %v1322_v14, %v1824_v35  ;;  %v688_v18 = vpop.f32.mrb[43].mxu0 }
 0x131   :  { %v934_v17 = vadd.f32 %v1394_v15, %v1824_v35  ;;  %v928_v19 = vpop.f32.mrb[43].mxu1  ;;  %v689_v20 = vadd.f32 %v1824_v35, %v688_v18 }
 0x132   :  { %v929_v21 = vadd.f32 %v1824_v35, %v928_v19  ;;  %1000 = vst.msk [vmem:[%s2309_s3 + $0x158] sm:$0xff] %vm119_vm1, %v694_v16 }
 0x133   :  { %1048 = vst.msk [vmem:[%s2309_s3 + $0x2d8] sm:$0xff] %vm119_vm1, %v934_v17  ;;  %999 = vst.msk [vmem:[%s2309_s3 + $0x150] sm:$0xff] %vm119_vm1, %v689_v20  ;;  %v1325_v22 = vpop.f32.mrb[44].mxu0 }
 0x134   :  { %1047 = vst.msk [vmem:[%s2309_s3 + $0x2d0] sm:$0xff] %vm119_vm1, %v929_v21  ;;  %v1397_v23 = vpop.f32.mrb[44].mxu1  ;;  %v704_v24 = vadd.f32 %v1325_v22, %v1824_v35  ;;  %v698_v26 = vpop.f32.mrb[45].mxu0 }
 0x135   :  { %v944_v25 = vadd.f32 %v1397_v23, %v1824_v35  ;;  %v938_v27 = vpop.f32.mrb[45].mxu1  ;;  %v699_v28 = vadd.f32 %v1824_v35, %v698_v26 }
 0x136   :  { %v939_v29 = vadd.f32 %v1824_v35, %v938_v27  ;;  %1002 = vst.msk [vmem:[%s2309_s3 + $0x168] sm:$0xff] %vm119_vm1, %v704_v24 }
 0x137   :  { %1050 = vst.msk [vmem:[%s2309_s3 + $0x2e8] sm:$0xff] %vm119_vm1, %v944_v25  ;;  %1001 = vst.msk [vmem:[%s2309_s3 + $0x160] sm:$0xff] %vm119_vm1, %v699_v28  ;;  %v1328_v30 = vpop.f32.mrb[46].mxu0 }
 0x138   :  { %1049 = vst.msk [vmem:[%s2309_s3 + $0x2e0] sm:$0xff] %vm119_vm1, %v939_v29  ;;  %v1400_v31 = vpop.f32.mrb[46].mxu1  ;;  %v714_v32 = vadd.f32 %v1328_v30, %v1824_v35  ;;  %v708_v34 = vpop.f32.mrb[47].mxu0 }
 0x139   :  { %v954_v33 = vadd.f32 %v1400_v31, %v1824_v35  ;;  %v948_v36 = vpop.f32.mrb[47].mxu1  ;;  %v709_v37 = vadd.f32 %v1824_v35, %v708_v34 }
 0x13a   :  { %v949_v38 = vadd.f32 %v1824_v35, %v948_v36  ;;  %1004 = vst.msk [vmem:[%s2309_s3 + $0x178] sm:$0xff] %vm119_vm1, %v714_v32 }
 0x13b   :  { %1052 = vst.msk [vmem:[%s2309_s3 + $0x2f8] sm:$0xff] %vm119_vm1, %v954_v33  ;;  %1003 = vst.msk [vmem:[%s2309_s3 + $0x170] sm:$0xff] %vm119_vm1, %v709_v37 }
 0x13c   :  { %1051 = vst.msk [vmem:[%s2309_s3 + $0x2f0] sm:$0xff] %vm119_vm1, %v949_v38 }

</bundles_post_ra>
